<compile_context>
chip_gen: v6e
topology: v6e:2x2x1
jax: 0.10.0
libtpu: 0.0.40
codegen_flags: <defaults>
</compile_context>

<pallas_src>
import jax
import jax.numpy as jnp
from jax.experimental import pallas as pl
from jax.experimental.pallas import tpu as pltpu


_TARGET_BLOCK_BYTES = 8 << 20   # ~8 MiB per input block
_SLAB_ROWS = 256                # inner-loop row slab (bounds live temporaries)
_SUBLANES = 8


def _round_up(x, m):
    return (x + m - 1) // m * m


def _make_kernel(tile_rows, slab_rows, steps, rows_total, lanes):
    n_slabs = tile_rows // slab_rows

    def kernel(pos_ref, neg_ref, out_ref):
        c = pl.program_id(0)          # parallel chunk (megacore on v7x)
        i = pl.program_id(1)          # sequential step within the chunk

        # The (8, lanes) output tile is resident across the step axis (its
        # block index ignores `i`), so it doubles as the accumulator.
        @pl.when(i == 0)
        def _():
            out_ref[...] = jnp.zeros_like(out_ref)

        block_idx = c * steps + i
        valid_rows = rows_total - block_idx * tile_rows   # may be <=0 or >=tile_rows

        def accumulate(mask_rows):
            def body(s, carry):
                off = pl.multiple_of(s * slab_rows, slab_rows)
                p = pos_ref[pl.ds(off, slab_rows), :].astype(jnp.float32)
                n = neg_ref[pl.ds(off, slab_rows), :].astype(jnp.float32)
                # log(1e-6 + 1 + exp(-(pos - neg))).  exp may overflow to +inf
                # for very negative distances, exactly like the PyTorch module.
                term = jnp.log(jnp.float32(1e-6) + 1.0 + jnp.exp(n - p))
                if mask_rows:
                    r = jax.lax.broadcasted_iota(jnp.int32, term.shape, 0) + off
                    term = jnp.where(r < valid_rows, term, jnp.float32(0.0))
                # Deferred reduction: fold the slab into the (8, lanes)
                # accumulator with pure VPU adds (no per-step XLU reduce).
                out_ref[...] += jnp.sum(
                    term.reshape(slab_rows // _SUBLANES, _SUBLANES, lanes),
                    axis=0)
                return carry

            if n_slabs == 1:
                body(0, 0)
            else:
                jax.lax.fori_loop(0, n_slabs, body, 0)

        # Mask-free fast path for full tiles; masked path only for the ragged
        # boundary tile (or a padded grid step, which contributes zero).
        @pl.when(valid_rows >= tile_rows)
        def _():
            accumulate(False)

        @pl.when(valid_rows < tile_rows)
        def _():
            accumulate(True)

    return kernel


def _bpr_term_sum(pos_f32, neg_f32):
    return jnp.sum(jnp.log(jnp.float32(1e-6) + 1.0 + jnp.exp(neg_f32 - pos_f32)))


def bpr_loss(pos_preds: jax.Array, neg_preds: jax.Array,
             reduction: str = "mean") -> jax.Array:
    assert pos_preds.shape == neg_preds.shape, "pos/neg shapes must match"
    total = int(pos_preds.size)
    if total == 0:
        return jnp.float32(0.0)

    flat_pos = pos_preds.reshape(-1)    # free bitcast
    flat_neg = neg_preds.reshape(-1)

    # Widest lane count whose 2-D reshape is a free bitcast.
    lanes = 128
    for w in (512, 256, 128):
        if total % w == 0:
            lanes = w
            break
    bulk = (total // lanes) * lanes
    tail = total - bulk                 # < 128, only when total % 128 != 0

    tail_sum = jnp.float32(0.0)
    if tail:
        tp = jax.lax.slice(flat_pos, (bulk,), (total,)).astype(jnp.float32)
        tn = jax.lax.slice(flat_neg, (bulk,), (total,)).astype(jnp.float32)
        tail_sum = _bpr_term_sum(tp, tn)

    if bulk == 0:
        loss = tail_sum
    else:
        if tail:
            # TODO(synk): this prefix slice can materialize a copy of the bulk;
            # it only triggers when total is not a multiple of 128.
            bulk_pos = jax.lax.slice(flat_pos, (0,), (bulk,))
            bulk_neg = jax.lax.slice(flat_neg, (0,), (bulk,))
        else:
            bulk_pos, bulk_neg = flat_pos, flat_neg

        rows = bulk // lanes
        pos2d = bulk_pos.reshape(rows, lanes)   # free bitcast (native dtype)
        neg2d = bulk_neg.reshape(rows, lanes)

        itemsize = jnp.dtype(pos2d.dtype).itemsize
        max_tile_rows = max(
            _SLAB_ROWS,
            (_TARGET_BLOCK_BYTES // (lanes * itemsize)) // _SLAB_ROWS * _SLAB_ROWS)
        tile_rows = min(_round_up(rows, _SLAB_ROWS), max_tile_rows)
        slab_rows = _SLAB_ROWS          # tile_rows is always a multiple of it

        total_tiles = pl.cdiv(rows, tile_rows)
        num_chunks = 2 if total_tiles >= 2 else 1   # both TCs on v7x megacore
        steps = pl.cdiv(total_tiles, num_chunks)
        last_tile = total_tiles - 1

        def in_index(c, i):
            # Clamp so the (at most one) padded grid step re-reads an
            # in-bounds block; its contribution is masked to zero in-kernel.
            return (jnp.minimum(c * steps + i, last_tile), 0)

        kernel = _make_kernel(tile_rows, slab_rows, steps, rows, lanes)

        partials = pl.pallas_call(
            kernel,
            out_shape=jax.ShapeDtypeStruct((num_chunks * _SUBLANES, lanes),
                                           jnp.float32),
            grid_spec=pltpu.PrefetchScalarGridSpec(
                num_scalar_prefetch=0,
                grid=(num_chunks, steps),
                in_specs=[
                    pl.BlockSpec((tile_rows, lanes), in_index),
                    pl.BlockSpec((tile_rows, lanes), in_index),
                ],
                out_specs=pl.BlockSpec((_SUBLANES, lanes), lambda c, i: (c, 0)),
            ),
            compiler_params=pltpu.CompilerParams(
                dimension_semantics=("parallel", "arbitrary"),
                vmem_limit_bytes=48 << 20,
            ),
            cost_estimate=pl.CostEstimate(
                flops=3 * total,
                transcendentals=2 * total,
                bytes_accessed=2 * total * itemsize
                + num_chunks * _SUBLANES * lanes * 4,
            ),
        )(pos2d, neg2d)

        loss = jnp.sum(partials) + tail_sum

    # reduction == 'mean': loss is already a scalar, so .mean() is identity.
    return loss


def _reference(pos, neg):
    d = pos.astype(jnp.float32) - neg.astype(jnp.float32)
    return jnp.sum(jnp.log(1e-6 + 1.0 + jnp.exp(-d)))


if __name__ == "__main__":
    key = jax.random.PRNGKey(0)
    k1, k2, k3, k4, k5, k6 = jax.random.split(key, 6)

    # Aligned f32 case (total % 512 == 0): zero-copy fast path.
    B, N = 16, 256
    pos = jax.random.normal(k1, (B, N), dtype=jnp.float32)
    neg = jax.random.normal(k2, (B, N), dtype=jnp.float32)
    loss = jax.block_until_ready(bpr_loss(pos, neg, reduction="mean"))
    ref = _reference(pos, neg)
    assert jnp.allclose(loss, ref, rtol=1e-4, atol=1e-2), (loss, ref)

    # Ragged case (total % 128 != 0): kernel on the bulk + wrapper-side tail.
    pos2 = jax.random.normal(k3, (7, 100), dtype=jnp.float32)
    neg2 = jax.random.normal(k4, (7, 100), dtype=jnp.float32)
    loss2 = jax.block_until_ready(bpr_loss(pos2, neg2, reduction="mean"))
    ref2 = _reference(pos2, neg2)
    assert jnp.allclose(loss2, ref2, rtol=1e-4, atol=1e-2), (loss2, ref2)

    # bf16 inputs streamed natively (cast to f32 inside the kernel).
    pos3 = jax.random.normal(k5, (8, 384), dtype=jnp.bfloat16)
    neg3 = jax.random.normal(k6, (8, 384), dtype=jnp.bfloat16)
    loss3 = jax.block_until_ready(bpr_loss(pos3, neg3, reduction="mean"))
    ref3 = _reference(pos3, neg3)
    assert jnp.allclose(loss3, ref3, rtol=1e-3, atol=1e-1), (loss3, ref3)

    print("KERNEL_OK")
</pallas_src>

<mosaic_0001>
module attributes {stable_mosaic.version = 11 : i64} {
  func.func @kernel(%arg0: i32, %arg1: i32, %arg2: memref<256x512xf32, #tpu.memory_space<vmem>>, %arg3: memref<256x512xf32, #tpu.memory_space<vmem>>, %arg4: memref<8x512xf32, #tpu.memory_space<vmem>>) attributes {dimension_semantics = [#tpu.dimension_semantics<parallel>, #tpu.dimension_semantics<arbitrary>], iteration_bounds = array<i64: 1, 1>, scalar_prefetch = 0 : i64, scratch_operands = 0 : i64, tpu.core_type = #tpu.core_type<tc>, window_params = [{transform_indices = @transform_0, window_bounds = array<i64: 256, 512>}, {transform_indices = @transform_1, window_bounds = array<i64: 256, 512>}, {transform_indices = @transform_2, window_bounds = array<i64: 8, 512>}]} {
    %c0_i32 = arith.constant 0 : i32
    %0 = arith.cmpi eq, %arg1, %c0_i32 : i32
    %1 = arith.extui %0 : i1 to i32
    %c0_i32_0 = arith.constant 0 : i32
    %2 = arith.cmpi ne, %1, %c0_i32_0 : i32
    scf.if %2 {
      %cst = arith.constant 0.000000e+00 : f32
      %13 = vector.broadcast %cst : f32 to vector<8x512xf32>
      %c0 = arith.constant 0 : index
      %c0_5 = arith.constant 0 : index
      %14 = vector.load %arg4[%c0, %c0_5] : memref<8x512xf32, #tpu.memory_space<vmem>>, vector<8x512xf32>
      tpu.vector_store %arg4[%c0, %c0_5], %13 {strides = array<i32>} : memref<8x512xf32, #tpu.memory_space<vmem>>, vector<8x512xf32>,
    } else {
    }
    %c1_i32 = arith.constant 1 : i32
    %3 = arith.muli %arg0, %c1_i32 : i32
    %4 = arith.addi %3, %arg1 : i32
    %c256_i32 = arith.constant 256 : i32
    %5 = arith.muli %4, %c256_i32 : i32
    %c8_i32 = arith.constant 8 : i32
    %6 = arith.subi %c8_i32, %5 : i32
    %c256_i32_1 = arith.constant 256 : i32
    %7 = arith.cmpi sge, %6, %c256_i32_1 : i32
    %8 = arith.extui %7 : i1 to i32
    %c0_i32_2 = arith.constant 0 : i32
    %9 = arith.cmpi ne, %8, %c0_i32_2 : i32
    scf.if %9 {
      %c0_i32_5 = arith.constant 0 : i32
      %13 = tpu.assume_multiple %c0_i32_5, 256 : i32
      %14 = arith.index_cast %13 : i32 to index
      %c0 = arith.constant 0 : index
      %15 = vector.load %arg2[%14, %c0] : memref<256x512xf32, #tpu.memory_space<vmem>>, vector<256x512xf32>
      %16 = arith.index_cast %13 : i32 to index
      %c0_6 = arith.constant 0 : index
      %17 = vector.load %arg3[%16, %c0_6] : memref<256x512xf32, #tpu.memory_space<vmem>>, vector<256x512xf32>
      %cst = arith.constant 9.99999997E-7 : f32
      %cst_7 = arith.constant 1.000000e+00 : f32
      %18 = arith.addf %cst, %cst_7 : f32
      %19 = arith.subf %17, %15 : vector<256x512xf32>
      %20 = math.exp %19 : vector<256x512xf32>
      %21 = vector.broadcast %18 : f32 to vector<256x512xf32>
      %22 = arith.addf %21, %20 : vector<256x512xf32>
      %23 = math.log %22 : vector<256x512xf32>
      %c0_8 = arith.constant 0 : index
      %c0_9 = arith.constant 0 : index
      %24 = vector.load %arg4[%c0_8, %c0_9] : memref<8x512xf32, #tpu.memory_space<vmem>>, vector<8x512xf32>
      %25 = vector.shape_cast %23 : vector<256x512xf32> to vector<32x8x512xf32>
      %cst_10 = arith.constant dense<0.000000e+00> : vector<8x512xf32>
      %26 = vector.multi_reduction <add>, %25, %cst_10 [0] : vector<32x8x512xf32> to vector<8x512xf32>
      %27 = arith.addf %24, %26 : vector<8x512xf32>
      %c0_11 = arith.constant 0 : index
      %c0_12 = arith.constant 0 : index
      %28 = vector.load %arg4[%c0_11, %c0_12] : memref<8x512xf32, #tpu.memory_space<vmem>>, vector<8x512xf32>
      tpu.vector_store %arg4[%c0_11, %c0_12], %27 {strides = array<i32>} : memref<8x512xf32, #tpu.memory_space<vmem>>, vector<8x512xf32>,
    } else {
    }
    %c256_i32_3 = arith.constant 256 : i32
    %10 = arith.cmpi slt, %6, %c256_i32_3 : i32
    %11 = arith.extui %10 : i1 to i32
    %c0_i32_4 = arith.constant 0 : i32
    %12 = arith.cmpi ne, %11, %c0_i32_4 : i32
    scf.if %12 {
      %c0_i32_5 = arith.constant 0 : i32
      %13 = tpu.assume_multiple %c0_i32_5, 256 : i32
      %14 = arith.index_cast %13 : i32 to index
      %c0 = arith.constant 0 : index
      %15 = vector.load %arg2[%14, %c0] : memref<256x512xf32, #tpu.memory_space<vmem>>, vector<256x512xf32>
      %16 = arith.index_cast %13 : i32 to index
      %c0_6 = arith.constant 0 : index
      %17 = vector.load %arg3[%16, %c0_6] : memref<256x512xf32, #tpu.memory_space<vmem>>, vector<256x512xf32>
      %cst = arith.constant 9.99999997E-7 : f32
      %cst_7 = arith.constant 1.000000e+00 : f32
      %18 = arith.addf %cst, %cst_7 : f32
      %19 = arith.subf %17, %15 : vector<256x512xf32>
      %20 = math.exp %19 : vector<256x512xf32>
      %21 = vector.broadcast %18 : f32 to vector<256x512xf32>
      %22 = arith.addf %21, %20 : vector<256x512xf32>
      %23 = math.log %22 : vector<256x512xf32>
      %24 = tpu.iota {dimensions = array<i32: 0>} : vector<256x512xi32>
      %25 = vector.broadcast %13 : i32 to vector<256x512xi32>
      %26 = arith.addi %24, %25 : vector<256x512xi32>
      %27 = vector.broadcast %6 : i32 to vector<256x512xi32>
      %28 = arith.cmpi slt, %26, %27 : vector<256x512xi32>
      %cst_8 = arith.constant 0.000000e+00 : f32
      %29 = vector.broadcast %cst_8 : f32 to vector<256x512xf32>
      %30 = arith.select %28, %23, %29 : vector<256x512xi1>, vector<256x512xf32>
      %c0_9 = arith.constant 0 : index
      %c0_10 = arith.constant 0 : index
      %31 = vector.load %arg4[%c0_9, %c0_10] : memref<8x512xf32, #tpu.memory_space<vmem>>, vector<8x512xf32>
      %32 = vector.shape_cast %30 : vector<256x512xf32> to vector<32x8x512xf32>
      %cst_11 = arith.constant dense<0.000000e+00> : vector<8x512xf32>
      %33 = vector.multi_reduction <add>, %32, %cst_11 [0] : vector<32x8x512xf32> to vector<8x512xf32>
      %34 = arith.addf %31, %33 : vector<8x512xf32>
      %c0_12 = arith.constant 0 : index
      %c0_13 = arith.constant 0 : index
      %35 = vector.load %arg4[%c0_12, %c0_13] : memref<8x512xf32, #tpu.memory_space<vmem>>, vector<8x512xf32>
      tpu.vector_store %arg4[%c0_12, %c0_13], %34 {strides = array<i32>} : memref<8x512xf32, #tpu.memory_space<vmem>>, vector<8x512xf32>,
    } else {
    }
    return
  }
  func.func @transform_0(%arg0: i32, %arg1: i32) -> (i32, i32) {
    %c1_i32 = arith.constant 1 : i32
    %0 = arith.muli %arg0, %c1_i32 : i32
    %1 = arith.addi %0, %arg1 : i32
    %c0_i32 = arith.constant 0 : i32
    %2 = arith.minsi %1, %c0_i32 : i32
    %c0_i32_0 = arith.constant 0 : i32
    %c0_i32_1 = arith.constant 0 : i32
    return %2, %c0_i32_0 : i32, i32
  }
  func.func @transform_1(%arg0: i32, %arg1: i32) -> (i32, i32) {
    %c1_i32 = arith.constant 1 : i32
    %0 = arith.muli %arg0, %c1_i32 : i32
    %1 = arith.addi %0, %arg1 : i32
    %c0_i32 = arith.constant 0 : i32
    %2 = arith.minsi %1, %c0_i32 : i32
    %c0_i32_0 = arith.constant 0 : i32
    %c0_i32_1 = arith.constant 0 : i32
    return %2, %c0_i32_0 : i32, i32
  }
  func.func @transform_2(%arg0: i32, %arg1: i32) -> (i32, i32) {
    %c0_i32 = arith.constant 0 : i32
    %c0_i32_0 = arith.constant 0 : i32
    return %arg0, %c0_i32 : i32, i32
  }
}

</mosaic_0001>

<bundles_post_ra>
// kernel: tpu_custom_call.1
= control target key start
LH: loop header
LB: loop body
LE: loop exit
PB: predicated region body
PF: predicated region fallthrough
CT: control target
= control target key end

     0   :  { %7 = vsyncpa [#allocation3], 0  ;;  %s2791_s0 = inlined_call_operand.hbm [shape: f32[8,512], index: 0, kind: input, shape index: {}]   ;;  %s2792_s1 = inlined_call_operand.hbm [shape: f32[8,512], index: 1, kind: input, shape index: {}]   ;;  %s2793_s2 = inlined_call_operand.hbm [shape: f32[8,512], index: 2, kind: output, shape index: {}]  }
   0x1   :  { %8 = vsyncpa [#allocation6], 0 }
   0x2   :  { %9 = vsyncpa [#allocation4], 0 }
   0x3   :  { %21 = vsyncadd [#allocation3], 15872  ;;  %s2762_s9 = smov [#allocation2]  }
   0x4   :  { %s27_s10 = sshll.u32 %s2762_s9, 4  ;;  %s28_s10 = int_to_ptr.vmem [resolvable:$true] %s27_s10 }
   0x5   :  { %s2704_s11 = scalar_lea.vmem %s28_s10, 512  ;;  %s2708_s12 = scalar_lea.vmem %s28_s10, 16384 }
   0x6   :  { %p2705_p0 = scmp.ne.s32.totalorder %s28_s10, %s2704_s11  ;;  %p2709_p1 = scmp.lt.s32.totalorder %s28_s10, %s28_s10 }
   0x7   :  { %p2710_p2 = scmp.lt.s32.totalorder %s2708_s12, %s2704_s11 }
   0x9   :  { %p2711_p3 = por %p2710_p2, %p2709_p1 }
   0xb   :  { %p2712_p4 = pnand %p2711_p3, %p2705_p0 }
   0xd   :  { %2715 = shalt.err (!%p2712_p4)
}
   0xe   :  { %s2763_s13 = smov 512   ;;  %s2764_s14 = smov 32  }
   0xf   :  { %33 = dma.hbm_to_vmem [thread:$0]  %s2791_s0, 512, %s28_s10, [#allocation3], %s2763_s13, %s2763_s13, %s2764_s14  }
  0x10   :  { %45 = vsyncadd [#allocation6], 15872  ;;  %s2765_s17 = smov [#allocation5]  }
  0x11   :  { %s51_s18 = sshll.u32 %s2765_s17, 4  ;;  %s52_s18 = int_to_ptr.vmem [resolvable:$true] %s51_s18 }
  0x12   :  { %s2724_s19 = scalar_lea.vmem %s52_s18, 512  ;;  %s2728_s20 = scalar_lea.vmem %s52_s18, 16384 }
  0x13   :  { %p2725_p5 = scmp.ne.s32.totalorder %s52_s18, %s2724_s19  ;;  %p2729_p6 = scmp.lt.s32.totalorder %s52_s18, %s52_s18 }
  0x14   :  { %p2730_p7 = scmp.lt.s32.totalorder %s2728_s20, %s2724_s19 }
  0x16   :  { %p2731_p8 = por %p2730_p7, %p2729_p6 }
  0x18   :  { %p2732_p9 = pnand %p2731_p8, %p2725_p5 }
  0x1a   :  { %2735 = shalt.err (!%p2732_p9)
}
  0x1b   :  { %57 = dma.hbm_to_vmem [thread:$0]  %s2792_s1, 512, %s52_s18, [#allocation6], %s2763_s13, %s2763_s13, %s2764_s14  }
  0x1c   :  { %2756 = dma.done.wait [#allocation3], 16384  }
  0x1d   :  { %2757 = vsyncadd [#allocation3], 4294950912 }
  0x1e   :  { %2758 = dma.done.wait [#allocation6], 16384  }
  0x1f   :  { %2759 = vsyncadd [#allocation6], 4294950912  ;;  %v1265_v0 = vld [vmem:[#allocation2] sm:$0xff]  ;;  %v1266_v2 = vld [vmem:[#allocation2 + $0x8] sm:$0xff]  ;;  %s2766_s0 = smov [#allocation7]  }
  0x20   :  { %v1395_v1 = vld [vmem:[#allocation5] sm:$0xff]  ;;  %v1396_v4 = vld [vmem:[#allocation5 + $0x8] sm:$0xff]  ;;  %v1267_v5 = vld [vmem:[#allocation2 + $0x10] sm:$0xff]  ;;  %s2660_s1 = sshll.u32 %s2766_s0, 4  ;;  %s2661_s1 = int_to_ptr.vmem [resolvable:$true] %s2660_s1 }
  0x21   :  { %v1523_v3 = vsub.f32 %v1395_v1, %v1265_v0  ;;  %v1397_v6 = vld [vmem:[#allocation5 + $0x10] sm:$0xff]  ;;  %v1524_v7 = vsub.f32 %v1396_v4, %v1266_v2  ;;  %v1268_v9 = vld [vmem:[#allocation2 + $0x18] sm:$0xff]  ;;  %s2736_s23 = scalar_lea.vmem %s2661_s1, 512  ;;  %p2741_p11 = scmp.lt.s32.totalorder %s2661_s1, %s2661_s1 }
  0x22   :  { %v1525_v8 = vsub.f32 %v1397_v6, %v1267_v5  ;;  %v1398_v10 = vld [vmem:[#allocation5 + $0x18] sm:$0xff]  ;;  %p2737_p10 = scmp.ne.s32.totalorder %s2661_s1, %s2736_s23  ;;  %p2742_p12 = scmp.lt.s32.totalorder %s2736_s23, %s2736_s23 }
  0x23   :  { %v1651_v11 = vmul.f32 1.442695, %v1523_v3  ;;  %v1526_v12 = vsub.f32 %v1398_v10, %v1268_v9  ;;  %v1653_v13 = vmul.f32 1.442695, %v1524_v7 }
  0x24   :  { %v1655_v14 = vmul.f32 1.442695, %v1525_v8  ;;  %p2743_p13 = por %p2742_p12, %p2741_p11 }
  0x25   :  { %2680 = vpow2.f32 %v1651_v11  ;;  %v1657_v15 = vmul.f32 1.442695, %v1526_v12 }
  0x26   :  { %2682 = vpow2.f32 %v1653_v13  ;;  %p2744_p0 = pnand %p2743_p13, %p2737_p10 }
  0x27   :  { %2684 = vpow2.f32 %v1655_v14 }
  0x28   :  { %2686 = vpow2.f32 %v1657_v15 }
  0x32   :  { %v2681_v16 = vpop.eup %2680 }
  0x33   :  { %v2683_v17 = vpop.eup %2682  ;;  %v1907_v18 = vadd.f32 1.000001, %v2681_v16 }
  0x34   :  { %v2685_v19 = vpop.eup %2684  ;;  %v1908_v20 = vadd.f32 1.000001, %v2683_v17 }
  0x35   :  { %v2687_v21 = vpop.eup %2686  ;;  %2688 = vlog2.f32 %v1907_v18  ;;  %v1909_v22 = vadd.f32 1.000001, %v2685_v19 }
  0x36   :  { %2690 = vlog2.f32 %v1908_v20  ;;  %v1910_v23 = vadd.f32 1.000001, %v2687_v21 }
  0x37   :  { %2692 = vlog2.f32 %v1909_v22 }
  0x38   :  { %2694 = vlog2.f32 %v1910_v23 }
  0x42   :  { %v2689_v24 = vpop.eup %2688 }
  0x43   :  { %v2691_v25 = vpop.eup %2690  ;;  %v2036_v26 = vmul.f32 0.6931472, %v2689_v24 }
  0x44   :  { %v2693_v27 = vpop.eup %2692  ;;  %v2038_v28 = vmul.f32 0.6931472, %v2691_v25 }
  0x45   :  { %v2695_v29 = vpop.eup %2694  ;;  %v2040_v30 = vmul.f32 0.6931472, %v2693_v27  ;;  %2650 = vst [vmem:[#allocation7] sm:$0xff] %v2036_v26 }
  0x46   :  { %v2042_v31 = vmul.f32 0.6931472, %v2695_v29  ;;  %2651 = vst [vmem:[#allocation7 + $0x8] sm:$0xff] %v2038_v28 }
  0x47   :  { %2652 = vst [vmem:[#allocation7 + $0x10] sm:$0xff] %v2040_v30 }
  0x48   :  { %2653 = vst [vmem:[#allocation7 + $0x18] sm:$0xff] %v2042_v31 }
  0x49   :  { %2747 = shalt.err (!%p2744_p0)
}
  0x4a   :  { %2663 = dma.vmem_to_hbm [thread:$0]  %s2661_s1, 512, %s2793_s2, [#allocation4]  }
  0x4b   :  { %2760 = dma.done.wait [#allocation4], 512  }
  0x4c   :  { %2761 = vsyncadd [#allocation4], 4294966784 }
  0x4d   :  { %2667 = vsyncpa [#allocation3], 1 }
  0x4e   :  { %2668 = vsyncpa [#allocation6], 1 }
  0x4f   :  { %2669 = vsyncpa [#allocation4], 1 }

</bundles_post_ra>
